<compile_context>
chip_gen: v6e
topology: v6e:2x2x1
jax: 0.10.0
libtpu: 0.0.40
codegen_flags: <defaults>
</compile_context>

<pallas_src>
import functools

import jax
import jax.numpy as jnp
from jax.experimental import pallas as pl
from jax.experimental.pallas import tpu as pltpu

ROT_SIZE = 4
SCALE_SIZE = 3
XYZ_SIZE = 3
HEAD_OUT = ROT_SIZE + SCALE_SIZE + XYZ_SIZE      # 10
HEAD_PAD = 128                                   # lane-dense fused-head output width
HIDDEN_SIZE = 256
INTERMEDIATE_SIZE = 128
EMBEDDING_DIM = 10
EXPR_DIM = 100
PE_DIM = 3 + EMBEDDING_DIM * 2 * 3               # 63
INPUT_SIZE = PE_DIM + EXPR_DIM                   # 163


def _round_up(x, m):
    return (x + m - 1) // m * m


def _mlp_kernel(pe_h_ref, ex_h_ref, b1,
                w2, b2, w3, b3, w4, b4,
                w5h, b5h, out_ref):
    """One (tile_n)-row tile of the MLP + folded heads.  bf16 MXU, f32 accumulate."""
    f32 = jnp.float32
    bf16 = jnp.bfloat16

    # Layer 1 was decomposed outside the kernel: x@W1 = pe@W1[:63] + expr@W1[63:].
    # pe part arrives in bf16 (halved HBM stream); upcast for the f32 epilogue.
    h = jnp.maximum(pe_h_ref[...].astype(f32) + ex_h_ref[...] + b1[...],
                    0.0).astype(bf16)

    h = jnp.maximum(
        jnp.dot(h, w2[...], preferred_element_type=f32) + b2[...], 0.0).astype(bf16)
    h = jnp.maximum(
        jnp.dot(h, w3[...], preferred_element_type=f32) + b3[...], 0.0).astype(bf16)
    h = jnp.maximum(
        jnp.dot(h, w4[...], preferred_element_type=f32) + b4[...], 0.0).astype(bf16)

    # Layer 5 (no ReLU) and the rot|scale|xyz heads are folded offline (in f32)
    # into one (256,128) weight: a single K=256 matmul + one lane-dense bf16 store.
    out_ref[...] = (jnp.dot(h, w5h[...], preferred_element_type=f32)
                    + b5h[...]).astype(out_ref.dtype)


def mlp_pallas(h1_pe, h1_ex, kparams, *, tile_n=1024):
    """h1_pe: (N, 256) bf16 = pe @ W1[:63];  h1_ex: (B, 256) f32 = expr @ W1[63:].
    Returns the padded (B, n_pad, HEAD_PAD) bf16 slab = [rot | scale | xyz | 0...]."""
    N = h1_pe.shape[0]
    B = h1_ex.shape[0]

    tile_n = min(tile_n, _round_up(N, 8))        # multiple of 8 sublanes
    if B == 1 and _round_up(N, 8) <= tile_n:
        # v7x has 2 TensorCores; guarantee >= 2 "parallel" grid steps so the
        # second core is not idle for small single-batch calls.
        tile_n = max(8, _round_up(pl.cdiv(N, 2), 8))
    n_pad = _round_up(N, tile_n)

    pe_p = jnp.pad(h1_pe, ((0, n_pad - N), (0, 0))) if n_pad != N else h1_pe
    ex_p = h1_ex.reshape(B, 1, HIDDEN_SIZE)

    (b1, w2, b2, w3, b3, w4, b4, w5h, b5h) = kparams

    def full(arr):
        # Grid-invariant parameter arrays: whole (small) array resident in VMEM,
        # same block every step (re-DMA elided).
        # TODO(synk): pipeline_mode=pl.Buffered(1) would drop their second buffer
        # copy (~0.5 MiB); left at the default depth to keep the build conservative.
        return pl.BlockSpec(arr.shape, lambda j, b: (0,) * arr.ndim)

    rows = B * n_pad
    param_bytes = sum(int(p.size) * p.dtype.itemsize for p in kparams)
    cost = pl.CostEstimate(
        flops=2 * rows * (3 * HIDDEN_SIZE * HIDDEN_SIZE
                          + HIDDEN_SIZE * HEAD_PAD),
        transcendentals=0,
        bytes_accessed=(n_pad * HIDDEN_SIZE * 2      # bf16 pe stream, read ONCE
                        + B * HIDDEN_SIZE * 4        # f32 expr rows
                        + rows * HEAD_PAD * 2        # bf16 output slab
                        + param_bytes),
    )

    out = pl.pallas_call(
        _mlp_kernel,
        out_shape=jax.ShapeDtypeStruct((B, n_pad, HEAD_PAD), jnp.bfloat16),
        grid_spec=pltpu.PrefetchScalarGridSpec(
            num_scalar_prefetch=0,
            # Batch is the INNER grid axis: the large pe tile's block index is
            # unchanged across consecutive steps, so Pallas skips its re-DMA and
            # pe is streamed from HBM once instead of B times.
            grid=(n_pad // tile_n, B),
            in_specs=[
                pl.BlockSpec((tile_n, HIDDEN_SIZE), lambda j, b: (j, 0)),
                pl.BlockSpec((None, 1, HIDDEN_SIZE), lambda j, b: (b, 0, 0)),
            ] + [full(p) for p in kparams],
            out_specs=pl.BlockSpec((None, tile_n, HEAD_PAD),
                                   lambda j, b: (b, j, 0)),
        ),
        compiler_params=pltpu.CompilerParams(
            dimension_semantics=("parallel", "parallel")),
        cost_estimate=cost,
    )(pe_p, ex_p, *kparams)

    return out


def positional_encoding(x, L):
    # torch: cat([x, sin(2^0 x), cos(2^0 x), ..., sin(2^{L-1} x), cos(2^{L-1} x)], dim=1)
    out = [x]
    for j in range(L):
        out.append(jnp.sin((2.0 ** j) * x))
        out.append(jnp.cos((2.0 ** j) * x))
    return jnp.concatenate(out, axis=1)


def init_params(key):
    """Deterministic init mimicking torch.nn.Linear default (U[-1/sqrt(fan_in), ...]).
    Weights stored (in_features, out_features) so y = x @ W + b."""
    dims = [
        (INPUT_SIZE, HIDDEN_SIZE),
        (HIDDEN_SIZE, HIDDEN_SIZE),
        (HIDDEN_SIZE, HIDDEN_SIZE),
        (HIDDEN_SIZE, HIDDEN_SIZE),
        (HIDDEN_SIZE, INTERMEDIATE_SIZE),
        (INTERMEDIATE_SIZE, ROT_SIZE),
        (INTERMEDIATE_SIZE, SCALE_SIZE),
        (INTERMEDIATE_SIZE, XYZ_SIZE),
    ]
    params = []
    for (fan_in, fan_out) in dims:
        key, kw, kb = jax.random.split(key, 3)
        bound = 1.0 / (fan_in ** 0.5)
        w = jax.random.uniform(kw, (fan_in, fan_out), jnp.float32, -bound, bound)
        b = jax.random.uniform(kb, (1, fan_out), jnp.float32, -bound, bound)
        params.extend([w, b])
    return tuple(params)


def pack_kernel_params(params):
    """f32 torch-layout params -> kernel params (bf16 weights, layer-5+head folded).

    The fold is done in float32 (no nonlinearity between layer 5 and the heads),
    then cast to bf16, so no extra rounding is introduced on top of the existing
    bf16-matmul error."""
    (w1, b1, w2, b2, w3, b3, w4, b4, w5, b5, wr, br, ws, bs, wx, bx) = params
    bf16 = jnp.bfloat16
    wh = jnp.concatenate([wr, ws, wx], axis=1)                       # (128, 10)
    wh = jnp.pad(wh, ((0, 0), (0, HEAD_PAD - HEAD_OUT)))             # (128, 128), zero cols
    bh = jnp.concatenate([br, bs, bx], axis=1)                       # (1, 10)
    bh = jnp.pad(bh, ((0, 0), (0, HEAD_PAD - HEAD_OUT)))             # (1, 128)
    w5h = w5 @ wh                                                    # (256, 128) f32 fold
    b5h = b5 @ wh + bh                                               # (1, 128)  f32 fold
    return (b1,
            w2.astype(bf16), b2,
            w3.astype(bf16), b3,
            w4.astype(bf16), b4,
            w5h.astype(bf16), b5h)


@functools.partial(jax.jit, static_argnames=("use_pallas",))
def fully_connected_mlp_forward(canonical_template, expr_code, params,
                                use_pallas=True):
    """canonical_template: (N, 3), expr_code: (B, EXPR_DIM).
    Returns (del_xyz, del_scale, del_rot) with shapes (B,N,3),(B,N,3),(B,N,4)."""
    N = canonical_template.shape[0]
    B = expr_code.shape[0]

    pe = positional_encoding(canonical_template, EMBEDDING_DIM)      # (N, 63)
    w1 = params[0]

    if use_pallas:
        # Split layer-1 so the (B*N, 163) concat never hits HBM; pe half in bf16.
        h1_pe = (pe @ w1[:PE_DIM, :]).astype(jnp.bfloat16)           # (N, 256) bf16
        h1_ex = expr_code @ w1[PE_DIM:, :]                           # (B, 256) f32
        kparams = pack_kernel_params(params)
        out = mlp_pallas(h1_pe, h1_ex, kparams)                      # (B, n_pad, 128) bf16
        # Slice rot/scale/xyz straight from the padded slab (single fused
        # gather/cast pass, no intermediate (B,N,10) copy).
        rot = out[:, :N, :ROT_SIZE].astype(jnp.float32)
        scale = out[:, :N, ROT_SIZE:ROT_SIZE + SCALE_SIZE].astype(jnp.float32)
        xyz = out[:, :N, ROT_SIZE + SCALE_SIZE:HEAD_OUT].astype(jnp.float32)
    else:
        # plain-JAX f32 reference (same math as the torch module) for verification
        (_, b1, w2, b2, w3, b3, w4, b4, w5, b5,
         wr, br, ws, bs, wx, bx) = params
        pe_b = jnp.broadcast_to(pe[None, :, :], (B, N, PE_DIM))
        ex_b = jnp.broadcast_to(expr_code[:, None, :], (B, N, EXPR_DIM))
        x = jnp.concatenate([pe_b, ex_b], axis=2).reshape(B * N, INPUT_SIZE)
        h = jnp.maximum(x @ w1 + b1, 0.0)
        h = jnp.maximum(h @ w2 + b2, 0.0)
        h = jnp.maximum(h @ w3 + b3, 0.0)
        h = jnp.maximum(h @ w4 + b4, 0.0)
        inter = h @ w5 + b5
        rot = (inter @ wr + br).reshape(B, N, ROT_SIZE)
        scale = (inter @ ws + bs).reshape(B, N, SCALE_SIZE)
        xyz = (inter @ wx + bx).reshape(B, N, XYZ_SIZE)

    del_rot = rot
    del_scale = scale
    del_xyz = xyz.astype(jnp.float32)
    return del_xyz, del_scale, del_rot


if __name__ == "__main__":
    key = jax.random.PRNGKey(0)
    k_params, k_xyz, k_expr = jax.random.split(key, 3)

    params = init_params(k_params)

    B = 2
    N = 64
    canonical_template = jax.random.normal(k_xyz, (N, 3), jnp.float32)
    expr_code = jax.random.normal(k_expr, (B, EXPR_DIM), jnp.float32)

    del_xyz, del_scale, del_rot = jax.block_until_ready(
        fully_connected_mlp_forward(canonical_template, expr_code, params,
                                    use_pallas=True))

    ref_xyz, ref_scale, ref_rot = jax.block_until_ready(
        fully_connected_mlp_forward(canonical_template, expr_code, params,
                                    use_pallas=False))

    assert del_xyz.shape == (B, N, XYZ_SIZE)
    assert del_scale.shape == (B, N, SCALE_SIZE)
    assert del_rot.shape == (B, N, ROT_SIZE)

    # bf16-matmul / f32-accumulate path + bf16 output store vs full-f32 reference:
    # loose tolerance.
    assert jnp.allclose(del_xyz, ref_xyz, atol=2.5e-2, rtol=2.5e-2)
    assert jnp.allclose(del_scale, ref_scale, atol=2.5e-2, rtol=2.5e-2)
    assert jnp.allclose(del_rot, ref_rot, atol=2.5e-2, rtol=2.5e-2)

    print("KERNEL_OK")
</pallas_src>

<mosaic_0001>
module attributes {stable_mosaic.version = 11 : i64} {
  func.func @_mlp_kernel(%arg0: i32, %arg1: i32, %arg2: memref<64x256xbf16, #tpu.memory_space<vmem>>, %arg3: memref<1x1x256xf32, #tpu.memory_space<vmem>>, %arg4: memref<1x256xf32, #tpu.memory_space<vmem>>, %arg5: memref<256x256xbf16, #tpu.memory_space<vmem>>, %arg6: memref<1x256xf32, #tpu.memory_space<vmem>>, %arg7: memref<256x256xbf16, #tpu.memory_space<vmem>>, %arg8: memref<1x256xf32, #tpu.memory_space<vmem>>, %arg9: memref<256x256xbf16, #tpu.memory_space<vmem>>, %arg10: memref<1x256xf32, #tpu.memory_space<vmem>>, %arg11: memref<256x128xbf16, #tpu.memory_space<vmem>>, %arg12: memref<1x128xf32, #tpu.memory_space<vmem>>, %arg13: memref<1x64x128xbf16, #tpu.memory_space<vmem>>) attributes {dimension_semantics = [#tpu.dimension_semantics<parallel>, #tpu.dimension_semantics<parallel>], iteration_bounds = array<i64: 1, 2>, scalar_prefetch = 0 : i64, scratch_operands = 0 : i64, tpu.core_type = #tpu.core_type<tc>, window_params = [{transform_indices = @transform_0, window_bounds = array<i64: 64, 256>}, {transform_indices = @transform_1, window_bounds = array<i64: 1, 1, 256>}, {pipeline_mode = #tpu.pipeline_mode<synchronous>, transform_indices = @transform_2, window_bounds = array<i64: 1, 256>}, {pipeline_mode = #tpu.pipeline_mode<synchronous>, transform_indices = @transform_3, window_bounds = array<i64: 256, 256>}, {pipeline_mode = #tpu.pipeline_mode<synchronous>, transform_indices = @transform_4, window_bounds = array<i64: 1, 256>}, {pipeline_mode = #tpu.pipeline_mode<synchronous>, transform_indices = @transform_5, window_bounds = array<i64: 256, 256>}, {pipeline_mode = #tpu.pipeline_mode<synchronous>, transform_indices = @transform_6, window_bounds = array<i64: 1, 256>}, {pipeline_mode = #tpu.pipeline_mode<synchronous>, transform_indices = @transform_7, window_bounds = array<i64: 256, 256>}, {pipeline_mode = #tpu.pipeline_mode<synchronous>, transform_indices = @transform_8, window_bounds = array<i64: 1, 256>}, {pipeline_mode = #tpu.pipeline_mode<synchronous>, transform_indices = @transform_9, window_bounds = array<i64: 256, 128>}, {pipeline_mode = #tpu.pipeline_mode<synchronous>, transform_indices = @transform_10, window_bounds = array<i64: 1, 128>}, {transform_indices = @transform_11, window_bounds = array<i64: 1, 64, 128>}]} {
    %c0 = arith.constant 0 : index
    %c0_0 = arith.constant 0 : index
    %0 = vector.load %arg2[%c0, %c0_0] : memref<64x256xbf16, #tpu.memory_space<vmem>>, vector<64x256xbf16>
    %1 = arith.extf %0 : vector<64x256xbf16> to vector<64x256xf32>
    %c0_1 = arith.constant 0 : index
    %c0_2 = arith.constant 0 : index
    %c0_3 = arith.constant 0 : index
    %2 = vector.load %arg3[%c0_1, %c0_2, %c0_3] : memref<1x1x256xf32, #tpu.memory_space<vmem>>, vector<1x1x256xf32>
    %3 = vector.shape_cast %2 : vector<1x1x256xf32> to vector<1x256xf32>
    %4 = vector.broadcast %3 : vector<1x256xf32> to vector<64x256xf32>
    %5 = arith.addf %1, %4 : vector<64x256xf32>
    %c0_4 = arith.constant 0 : index
    %c0_5 = arith.constant 0 : index
    %6 = vector.load %arg4[%c0_4, %c0_5] : memref<1x256xf32, #tpu.memory_space<vmem>>, vector<1x256xf32>
    %7 = vector.broadcast %6 : vector<1x256xf32> to vector<64x256xf32>
    %8 = arith.addf %5, %7 : vector<64x256xf32>
    %cst = arith.constant 0.000000e+00 : f32
    %9 = vector.broadcast %cst : f32 to vector<64x256xf32>
    %10 = arith.maximumf %8, %9 : vector<64x256xf32>
    %11 = arith.truncf %10 : vector<64x256xf32> to vector<64x256xbf16>
    %c0_6 = arith.constant 0 : index
    %c0_7 = arith.constant 0 : index
    %12 = vector.load %arg5[%c0_6, %c0_7] : memref<256x256xbf16, #tpu.memory_space<vmem>>, vector<256x256xbf16>
    %cst_8 = arith.constant dense<0.000000e+00> : vector<64x256xf32>
    %13 = tpu.matmul %11, %12, %cst_8 {dimension_numbers = #tpu.dot_dimension_numbers<[1], [0], [0], [1], [0, 0, 1, 1], [], []>} : vector<64x256xbf16>, vector<256x256xbf16>, vector<64x256xf32> -> vector<64x256xf32>
    %c0_9 = arith.constant 0 : index
    %c0_10 = arith.constant 0 : index
    %14 = vector.load %arg6[%c0_9, %c0_10] : memref<1x256xf32, #tpu.memory_space<vmem>>, vector<1x256xf32>
    %15 = vector.broadcast %14 : vector<1x256xf32> to vector<64x256xf32>
    %16 = arith.addf %13, %15 : vector<64x256xf32>
    %cst_11 = arith.constant 0.000000e+00 : f32
    %17 = vector.broadcast %cst_11 : f32 to vector<64x256xf32>
    %18 = arith.maximumf %16, %17 : vector<64x256xf32>
    %19 = arith.truncf %18 : vector<64x256xf32> to vector<64x256xbf16>
    %c0_12 = arith.constant 0 : index
    %c0_13 = arith.constant 0 : index
    %20 = vector.load %arg7[%c0_12, %c0_13] : memref<256x256xbf16, #tpu.memory_space<vmem>>, vector<256x256xbf16>
    %cst_14 = arith.constant dense<0.000000e+00> : vector<64x256xf32>
    %21 = tpu.matmul %19, %20, %cst_14 {dimension_numbers = #tpu.dot_dimension_numbers<[1], [0], [0], [1], [0, 0, 1, 1], [], []>} : vector<64x256xbf16>, vector<256x256xbf16>, vector<64x256xf32> -> vector<64x256xf32>
    %c0_15 = arith.constant 0 : index
    %c0_16 = arith.constant 0 : index
    %22 = vector.load %arg8[%c0_15, %c0_16] : memref<1x256xf32, #tpu.memory_space<vmem>>, vector<1x256xf32>
    %23 = vector.broadcast %22 : vector<1x256xf32> to vector<64x256xf32>
    %24 = arith.addf %21, %23 : vector<64x256xf32>
    %cst_17 = arith.constant 0.000000e+00 : f32
    %25 = vector.broadcast %cst_17 : f32 to vector<64x256xf32>
    %26 = arith.maximumf %24, %25 : vector<64x256xf32>
    %27 = arith.truncf %26 : vector<64x256xf32> to vector<64x256xbf16>
    %c0_18 = arith.constant 0 : index
    %c0_19 = arith.constant 0 : index
    %28 = vector.load %arg9[%c0_18, %c0_19] : memref<256x256xbf16, #tpu.memory_space<vmem>>, vector<256x256xbf16>
    %cst_20 = arith.constant dense<0.000000e+00> : vector<64x256xf32>
    %29 = tpu.matmul %27, %28, %cst_20 {dimension_numbers = #tpu.dot_dimension_numbers<[1], [0], [0], [1], [0, 0, 1, 1], [], []>} : vector<64x256xbf16>, vector<256x256xbf16>, vector<64x256xf32> -> vector<64x256xf32>
    %c0_21 = arith.constant 0 : index
    %c0_22 = arith.constant 0 : index
    %30 = vector.load %arg10[%c0_21, %c0_22] : memref<1x256xf32, #tpu.memory_space<vmem>>, vector<1x256xf32>
    %31 = vector.broadcast %30 : vector<1x256xf32> to vector<64x256xf32>
    %32 = arith.addf %29, %31 : vector<64x256xf32>
    %cst_23 = arith.constant 0.000000e+00 : f32
    %33 = vector.broadcast %cst_23 : f32 to vector<64x256xf32>
    %34 = arith.maximumf %32, %33 : vector<64x256xf32>
    %35 = arith.truncf %34 : vector<64x256xf32> to vector<64x256xbf16>
    %c0_24 = arith.constant 0 : index
    %c0_25 = arith.constant 0 : index
    %36 = vector.load %arg11[%c0_24, %c0_25] : memref<256x128xbf16, #tpu.memory_space<vmem>>, vector<256x128xbf16>
    %cst_26 = arith.constant dense<0.000000e+00> : vector<64x128xf32>
    %37 = tpu.matmul %35, %36, %cst_26 {dimension_numbers = #tpu.dot_dimension_numbers<[1], [0], [0], [1], [0, 0, 1, 1], [], []>} : vector<64x256xbf16>, vector<256x128xbf16>, vector<64x128xf32> -> vector<64x128xf32>
    %c0_27 = arith.constant 0 : index
    %c0_28 = arith.constant 0 : index
    %38 = vector.load %arg12[%c0_27, %c0_28] : memref<1x128xf32, #tpu.memory_space<vmem>>, vector<1x128xf32>
    %39 = vector.broadcast %38 : vector<1x128xf32> to vector<64x128xf32>
    %40 = arith.addf %37, %39 : vector<64x128xf32>
    %41 = arith.truncf %40 : vector<64x128xf32> to vector<64x128xbf16>
    %c0_29 = arith.constant 0 : index
    %c0_30 = arith.constant 0 : index
    %c0_31 = arith.constant 0 : index
    %42 = vector.load %arg13[%c0_29, %c0_30, %c0_31] : memref<1x64x128xbf16, #tpu.memory_space<vmem>>, vector<1x64x128xbf16>
    %43 = vector.shape_cast %42 : vector<1x64x128xbf16> to vector<64x128xbf16>
    %44 = vector.shape_cast %41 : vector<64x128xbf16> to vector<1x64x128xbf16>
    tpu.vector_store %arg13[%c0_29, %c0_30, %c0_31], %44 {strides = array<i32>} : memref<1x64x128xbf16, #tpu.memory_space<vmem>>, vector<1x64x128xbf16>,
    return
  }
  func.func @transform_0(%arg0: i32, %arg1: i32) -> (i32, i32) {
    %c0_i32 = arith.constant 0 : i32
    %c0_i32_0 = arith.constant 0 : i32
    return %arg0, %c0_i32 : i32, i32
  }
  func.func @transform_1(%arg0: i32, %arg1: i32) -> (i32, i32, i32) {
    %c0_i32 = arith.constant 0 : i32
    %c0_i32_0 = arith.constant 0 : i32
    %c0_i32_1 = arith.constant 0 : i32
    return %arg1, %c0_i32, %c0_i32_0 : i32, i32, i32
  }
  func.func @transform_2(%arg0: i32, %arg1: i32) -> (i32, i32) {
    %c0_i32 = arith.constant 0 : i32
    %c0_i32_0 = arith.constant 0 : i32
    %c0_i32_1 = arith.constant 0 : i32
    return %c0_i32, %c0_i32_0 : i32, i32
  }
  func.func @transform_3(%arg0: i32, %arg1: i32) -> (i32, i32) {
    %c0_i32 = arith.constant 0 : i32
    %c0_i32_0 = arith.constant 0 : i32
    %c0_i32_1 = arith.constant 0 : i32
    return %c0_i32, %c0_i32_0 : i32, i32
  }
  func.func @transform_4(%arg0: i32, %arg1: i32) -> (i32, i32) {
    %c0_i32 = arith.constant 0 : i32
    %c0_i32_0 = arith.constant 0 : i32
    %c0_i32_1 = arith.constant 0 : i32
    return %c0_i32, %c0_i32_0 : i32, i32
  }
  func.func @transform_5(%arg0: i32, %arg1: i32) -> (i32, i32) {
    %c0_i32 = arith.constant 0 : i32
    %c0_i32_0 = arith.constant 0 : i32
    %c0_i32_1 = arith.constant 0 : i32
    return %c0_i32, %c0_i32_0 : i32, i32
  }
  func.func @transform_6(%arg0: i32, %arg1: i32) -> (i32, i32) {
    %c0_i32 = arith.constant 0 : i32
    %c0_i32_0 = arith.constant 0 : i32
    %c0_i32_1 = arith.constant 0 : i32
    return %c0_i32, %c0_i32_0 : i32, i32
  }
  func.func @transform_7(%arg0: i32, %arg1: i32) -> (i32, i32) {
    %c0_i32 = arith.constant 0 : i32
    %c0_i32_0 = arith.constant 0 : i32
    %c0_i32_1 = arith.constant 0 : i32
    return %c0_i32, %c0_i32_0 : i32, i32
  }
  func.func @transform_8(%arg0: i32, %arg1: i32) -> (i32, i32) {
    %c0_i32 = arith.constant 0 : i32
    %c0_i32_0 = arith.constant 0 : i32
    %c0_i32_1 = arith.constant 0 : i32
    return %c0_i32, %c0_i32_0 : i32, i32
  }
  func.func @transform_9(%arg0: i32, %arg1: i32) -> (i32, i32) {
    %c0_i32 = arith.constant 0 : i32
    %c0_i32_0 = arith.constant 0 : i32
    %c0_i32_1 = arith.constant 0 : i32
    return %c0_i32, %c0_i32_0 : i32, i32
  }
  func.func @transform_10(%arg0: i32, %arg1: i32) -> (i32, i32) {
    %c0_i32 = arith.constant 0 : i32
    %c0_i32_0 = arith.constant 0 : i32
    %c0_i32_1 = arith.constant 0 : i32
    return %c0_i32, %c0_i32_0 : i32, i32
  }
  func.func @transform_11(%arg0: i32, %arg1: i32) -> (i32, i32, i32) {
    %c0_i32 = arith.constant 0 : i32
    %c0_i32_0 = arith.constant 0 : i32
    return %arg1, %arg0, %c0_i32 : i32, i32, i32
  }
}

</mosaic_0001>

<bundles_post_ra>
// kernel: fully_connected_mlp_forward.1
= control target key start
LH: loop header
LB: loop body
LE: loop exit
PB: predicated region body
PF: predicated region fallthrough
CT: control target
= control target key end

     0   :  { %s2248_s17 = smov 0   ;;  %s2250_s18 = smov 0   ;;  %s2732_s0 = inlined_call_operand.vmem [shape: bf16[64,256], index: 0, kind: input, shape index: {}]   ;;  %s2733_s1 = inlined_call_operand.vmem [shape: f32[2,1,256], index: 1, kind: input, shape index: {}]   ;;  %s2734_s2 = inlined_call_operand.vmem [shape: f32[1,256], index: 2, kind: input, shape index: {}]   ;;  %s2735_s3 = inlined_call_operand.vmem [shape: bf16[256,256], index: 3, kind: input, shape index: {}]   ;;  %s2736_s4 = inlined_call_operand.vmem [shape: f32[1,256], index: 4, kind: input, shape index: {}]   ;;  %s2737_s5 = inlined_call_operand.vmem [shape: bf16[256,256], index: 5, kind: input, shape index: {}]   ;;  %s2738_s6 = inlined_call_operand.vmem [shape: f32[1,256], index: 6, kind: input, shape index: {}]   ;;  %s2739_s7 = inlined_call_operand.vmem [shape: bf16[256,256], index: 7, kind: input, shape index: {}]   ;;  %s2740_s8 = inlined_call_operand.vmem [shape: f32[1,256], index: 8, kind: input, shape index: {}]   ;;  %s2741_s9 = inlined_call_operand.vmem [shape: bf16[256,128], index: 9, kind: input, shape index: {}]   ;;  %s2742_s10 = inlined_call_operand.vmem [shape: f32[1,128], index: 10, kind: input, shape index: {}]   ;;  %s2743_s11 = inlined_call_operand.vmem [shape: bf16[2,64,128], index: 11, kind: output, shape index: {}]  }
   0x1   :  { %s2252_s19 = smov 0  }
   0x2 LB: > { %s30_s20 = sadd.s32 1, %s2182_s18  ;;  %p1781_p0 = scmp.ge.s32.totalorder %s2186_s19, 1  ;;  %s2186_s19 = sphi %s2252_s19, %s21_s19   ;;  %s2182_s18 = sphi %s2250_s18, %s2745_s18   ;;  %s2178_s17 = sphi %s2248_s17, %s2744_s17  }
   0x3   : > { %p31_p1 = scmp.ge.s32.totalorder %s30_s20, 2  ;;  %p362_p2 = scmp.lt.s32.totalorder %s2186_s19, 3 }
   0x5   : > { %s2747_s20 = smov (%p31_p1, %s30_s20), 0  ;;  %p363_p3 = pnand %p1781_p0, %p362_p2 }
   0x6   : > { %p418_p4 = scmp.lt.s32.totalorder (!%p363_p3), %s2178_s17, 1 }
   0x7   : > { %366 = sbr.rel (%p363_p3) target bundleno = 925 (0x39d), region = 64 }
   0xc   : > { %v2004_v0 = vld [vmem:[%s2735_s3 + $0x74] ss:$8 sps:$4 sm:$0xff]   ;;  %v2006_v1 = vld [vmem:[%s2735_s3 + $0x70] ss:$8 sps:$4 sm:$0xff]   ;;  %v2007_v2 = vld [vmem:[%s2735_s3 + $0x64] ss:$8 sps:$4 sm:$0xff]   ;;  %v459_v8 = vlaneseq }
   0xd   : > { %741 = vmatprep.subr.bf16.mxu0 %v2004_v0  ;;  %v2009_v3 = vld [vmem:[%s2735_s3 + $0x60] ss:$8 sps:$4 sm:$0xff]   ;;  %v2010_v4 = vld [vmem:[%s2735_s3 + $0x54] ss:$8 sps:$4 sm:$0xff]   ;;  %v2012_v5 = vld [vmem:[%s2735_s3 + $0x50] ss:$8 sps:$4 sm:$0xff]  }
   0xe   : > { %742 = vmatpush1.bf16.msra.mxu0 %v2006_v1  ;;  %v2013_v6 = vld [vmem:[%s2735_s3 + $0x44] ss:$8 sps:$4 sm:$0xff]   ;;  %v2015_v7 = vld [vmem:[%s2735_s3 + $0x40] ss:$8 sps:$4 sm:$0xff]   ;;  %v2016_v9 = vld [vmem:[%s2735_s3 + $0x34] ss:$8 sps:$4 sm:$0xff]  }
   0xf   : > { %743 = vmatprep.subr.bf16.mxu0 %v2007_v2  ;;  %s2749_s17 = smov (!%p418_p4, %s2178_s17), 1  ;;  %v2018_v10 = vld [vmem:[%s2735_s3 + $0x30] ss:$8 sps:$4 sm:$0xff]   ;;  %v460_v11 = vshrl.u32 %v459_v8, 7  ;;  %v2019_v12 = vld [vmem:[%s2735_s3 + $0x24] ss:$8 sps:$4 sm:$0xff]  }
  0x10   : > { %s1782_s28 = sshll.u32 %s2749_s17, 1  ;;  %v2021_v13 = vld [vmem:[%s2735_s3 + $0x20] ss:$8 sps:$4 sm:$0xff]   ;;  %v2022_v15 = vld [vmem:[%s2735_s3 + $0x14] ss:$8 sps:$4 sm:$0xff]   ;;  %s1908_s16 = sshll.u32 %s2749_s17, 5 }
  0x11   : > { %s421_s14 = scalar_lea.vmem %s2733_s1, %s1782_s28  ;;  %v2308_v14 = vsub.s32 1, %v460_v11  ;;  %v2316_v16 = vld [vmem:[%s2732_s0] sm:$0xff]  ;;  %v2321_v17 = vld [vmem:[%s2732_s0 + $0x8] sm:$0xff]  ;;  %v2024_v22 = vld [vmem:[%s2735_s3 + $0x10] ss:$8 sps:$4 sm:$0xff]   ;;  %v2389_v47 = vsub.s32 0, %v460_v11  ;;  %s2717_s23 = scalar_lea.vmem %s2743_s11, %s1908_s16 }
  0x12   : > { %744 = vmatpush1.bf16.msra.mxu0 %v2009_v3  ;;  %v442_v18 = vunpack.c.h.bf16 %v2316_v16  ;;  %v444_v19 = vunpack.c.h.bf16 %v2321_v17  ;;  %v457_v20 = vld [vmem:[%s421_s14] sm:$0x3]  ;;  %v2025_v25 = vld [vmem:[%s2735_s3 + $0x4] ss:$8 sps:$4 sm:$0xff]   ;;  %v2052_v29 = vld [vmem:[%s2737_s5 + $0x74] ss:$8 sps:$4 sm:$0xff]   ;;  %v441_v53 = vunpack.c.l.bf16 %v2316_v16  ;;  %v443_v54 = vunpack.c.l.bf16 %v2321_v17 }
  0x13   : > { %745 = vmatprep.subr.bf16.mxu0 %v2010_v4  ;;  %v2328_v21 = vld [vmem:[%s2734_s2] sm:$0x3]  ;;  %v2334_v23 = vrot.slane %v457_v20, %v2308_v14  ;;  %v2054_v30 = vld [vmem:[%s2737_s5 + $0x70] ss:$8 sps:$4 sm:$0xff]   ;;  %v2055_v33 = vld [vmem:[%s2737_s5 + $0x64] ss:$8 sps:$4 sm:$0xff]   ;;  %1042 = vmatprep.subr.bf16.mxu1 %v2052_v29  ;;  %v2409_v55 = vrot.slane %v457_v20, %v2389_v47 }
  0x14   : > { %v2338_v24 = vrot.slane %v2328_v21, %v2308_v14  ;;  %v2027_v26 = vld [vmem:[%s2735_s3] ss:$8 sps:$4 sm:$0xff]   ;;  %v2028_v34 = vld [vmem:[%s2735_s3 + $0xf4] ss:$8 sps:$4 sm:$0xff]   ;;  %1043 = vmatpush1.bf16.msra.mxu1 %v2054_v30  ;;  %v2030_v38 = vld [vmem:[%s2735_s3 + $0xf0] ss:$8 sps:$4 sm:$0xff]   ;;  %v2437_v4 = vrot.slane %v2328_v21, %v2389_v47 }
  0x15   : > { %v470_v27 = vadd.f32 %v2334_v23, %v442_v18  ;;  %v472_v28 = vadd.f32 %v2334_v23, %v444_v19  ;;  %v2057_v37 = vld [vmem:[%s2737_s5 + $0x60] ss:$8 sps:$4 sm:$0xff]   ;;  %1044 = vmatprep.subr.bf16.mxu1 %v2055_v33  ;;  %v2031_v40 = vld [vmem:[%s2735_s3 + $0xe4] ss:$8 sps:$4 sm:$0xff]   ;;  %v2058_v41 = vld [vmem:[%s2737_s5 + $0x54] ss:$8 sps:$4 sm:$0xff]  }
  0x16   : > { %746 = vmatpush1.bf16.msra.mxu0 %v2012_v5  ;;  %v2033_v42 = vld [vmem:[%s2735_s3 + $0xe0] ss:$8 sps:$4 sm:$0xff]   ;;  %v2060_v43 = vld [vmem:[%s2737_s5 + $0x50] ss:$8 sps:$4 sm:$0xff]   ;;  %v2061_v44 = vld [vmem:[%s2737_s5 + $0x44] ss:$8 sps:$4 sm:$0xff]   ;;  %v469_v5 = vadd.f32 %v2409_v55, %v441_v53 }
  0x17   : > { %747 = vmatprep.subr.bf16.mxu0 %v2013_v6  ;;  %v498_v31 = vadd.f32 %v2338_v24, %v470_v27  ;;  %v500_v32 = vadd.f32 %v2338_v24, %v472_v28  ;;  %v2034_v45 = vld [vmem:[%s2735_s3 + $0xd4] ss:$8 sps:$4 sm:$0xff]   ;;  %v2036_v46 = vld [vmem:[%s2735_s3 + $0xd0] ss:$8 sps:$4 sm:$0xff]   ;;  %v2063_v48 = vld [vmem:[%s2737_s5 + $0x40] ss:$8 sps:$4 sm:$0xff]   ;;  %v471_v6 = vadd.f32 %v2409_v55, %v443_v54 }
  0x18   : > { %1045 = vmatpush1.bf16.msra.mxu1 %v2057_v37  ;;  %v2064_v49 = vld [vmem:[%s2737_s5 + $0x34] ss:$8 sps:$4 sm:$0xff]   ;;  %v2037_v50 = vld [vmem:[%s2735_s3 + $0xc4] ss:$8 sps:$4 sm:$0xff]   ;;  %v2066_v56 = vld [vmem:[%s2737_s5 + $0x30] ss:$8 sps:$4 sm:$0xff]   ;;  %v497_v16 = vadd.f32 %v2437_v4, %v469_v5 }
  0x19   : > { %v514_v35 = vmax.f32 %v498_v31, 0.0  ;;  %v516_v36 = vmax.f32 %v500_v32, 0.0  ;;  %1046 = vmatprep.subr.bf16.mxu1 %v2058_v41  ;;  %v435_v51 = vld [vmem:[%s2732_s0 + $0x10] sm:$0xff]  ;;  %v436_v52 = vld [vmem:[%s2732_s0 + $0x18] sm:$0xff]  ;;  %v2039_v57 = vld [vmem:[%s2735_s3 + $0xc0] ss:$8 sps:$4 sm:$0xff]   ;;  %v499_v17 = vadd.f32 %v2437_v4, %v471_v6 }
  0x1a   : > { %748 = vmatpush1.bf16.msra.mxu0 %v2015_v7  ;;  %v2040_v58 = vld [vmem:[%s2735_s3 + $0xb4] ss:$8 sps:$4 sm:$0xff]   ;;  %v446_v59 = vunpack.c.h.bf16 %v435_v51  ;;  %v448_v60 = vunpack.c.h.bf16 %v436_v52  ;;  %v2067_v61 = vld [vmem:[%s2737_s5 + $0x24] ss:$8 sps:$4 sm:$0xff]   ;;  %v445_v62 = vunpack.c.l.bf16 %v435_v51  ;;  %v447_v63 = vunpack.c.l.bf16 %v436_v52  ;;  %v2069_v0 = vld [vmem:[%s2737_s5 + $0x20] ss:$8 sps:$4 sm:$0xff]  }
  0x1b   : > { %749 = vmatprep.subr.bf16.mxu0 %v2016_v9  ;;  %v530_v39 = vpack.c.bf16 %v516_v36, %v514_v35  ;;  %v2042_v1 = vld [vmem:[%s2735_s3 + $0xb0] ss:$8 sps:$4 sm:$0xff]   ;;  %v2070_v2 = vld [vmem:[%s2737_s5 + $0x14] ss:$8 sps:$4 sm:$0xff]   ;;  %v2043_v3 = vld [vmem:[%s2735_s3 + $0xa4] ss:$8 sps:$4 sm:$0xff]  }
  0x1c   : > { %1047 = vmatpush1.bf16.msra.mxu1 %v2060_v43  ;;  %v474_v7 = vadd.f32 %v2334_v23, %v446_v59  ;;  %v476_v8 = vadd.f32 %v2334_v23, %v448_v60  ;;  %v473_v9 = vadd.f32 %v2409_v55, %v445_v62  ;;  %v2072_v11 = vld [vmem:[%s2737_s5 + $0x10] ss:$8 sps:$4 sm:$0xff]   ;;  %v437_v18 = vld [vmem:[%s2732_s0 + $0x20] sm:$0xff]  ;;  %v438_v19 = vld [vmem:[%s2732_s0 + $0x28] sm:$0xff]  ;;  %v513_v30 = vmax.f32 %v497_v16, 0.0 }
  0x1d   : > { %773 = vmatprep.mubr.bf16.mxu0 %v530_v39  ;;  %1048 = vmatprep.subr.bf16.mxu1 %v2061_v44  ;;  %v2048_v27 = vld [vmem:[%s2735_s3 + $0x90] ss:$8 sps:$4 sm:$0xff]   ;;  %v2076_v28 = vld [vmem:[%s2737_s5 + $0xf4] ss:$8 sps:$4 sm:$0xff]   ;;  %v2049_v29 = vld [vmem:[%s2735_s3 + $0x84] ss:$8 sps:$4 sm:$0xff]   ;;  %v452_v35 = vunpack.c.h.bf16 %v438_v19  ;;  %v451_v51 = vunpack.c.l.bf16 %v438_v19 }
  0x1e   : > { %750 = vmatpush1.bf16.msra.mxu0 %v2018_v10  ;;  %v475_v10 = vadd.f32 %v2409_v55, %v447_v63  ;;  %v502_v20 = vadd.f32 %v2338_v24, %v474_v7  ;;  %v504_v21 = vadd.f32 %v2338_v24, %v476_v8  ;;  %v515_v31 = vmax.f32 %v499_v17, 0.0  ;;  %v2051_v39 = vld [vmem:[%s2735_s3 + $0x80] ss:$8 sps:$4 sm:$0xff]   ;;  %v439_v41 = vld [vmem:[%s2732_s0 + $0x30] sm:$0xff] }
  0x1f   : > { %751 = vmatprep.subr.bf16.mxu0 %v2019_v12  ;;  %v2045_v12 = vld [vmem:[%s2735_s3 + $0xa0] ss:$8 sps:$4 sm:$0xff]   ;;  %v480_v44 = vadd.f32 %v2334_v23, %v452_v35  ;;  %v454_v54 = vunpack.c.h.bf16 %v439_v41  ;;  %v479_v59 = vadd.f32 %v2409_v55, %v451_v51  ;;  %v453_v5 = vunpack.c.l.bf16 %v439_v41  ;;  %v2090_v16 = vld [vmem:[%s2737_s5 + $0xb0] ss:$8 sps:$4 sm:$0xff]   ;;  %v2108_v35 = vld [vmem:[%s2739_s7 + $0x54] ss:$8 sps:$4 sm:$0xff]  }
  0x20   : > { %1049 = vmatpush1.bf16.msra.mxu1 %v2063_v48  ;;  %v518_v32 = vmax.f32 %v502_v20, 0.0  ;;  %v520_v33 = vmax.f32 %v504_v21, 0.0  ;;  %v529_v48 = vpack.c.bf16 %v515_v31, %v513_v30  ;;  %v2087_v7 = vld [vmem:[%s2737_s5 + $0xc0] ss:$8 sps:$4 sm:$0xff]   ;;  %v2100_v31 = vld [vmem:[%s2739_s7 + $0x70] ss:$8 sps:$4 sm:$0xff]  }
  0x21   : > { %1050 = vmatprep.subr.bf16.mxu1 %v2064_v49  ;;  %v508_v53 = vadd.f32 %v2338_v24, %v480_v44  ;;  %v482_v62 = vadd.f32 %v2334_v23, %v454_v54  ;;  %v2099_v30 = vld [vmem:[%s2737_s5 + $0x80] ss:$8 sps:$4 sm:$0xff]   ;;  %v2117_v41 = vld [vmem:[%s2739_s7 + $0x24] ss:$8 sps:$4 sm:$0xff]   ;;  %v2118_v44 = vld [vmem:[%s2739_s7 + $0x10] ss:$8 sps:$4 sm:$0xff]  }
  0x22   : > { %752 = vmatpush1.bf16.msra.mxu0 %v2021_v13  ;;  %v2073_v13 = vld [vmem:[%s2737_s5 + $0x4] ss:$8 sps:$4 sm:$0xff]   ;;  %v532_v49 = vpack.c.bf16 %v520_v33, %v518_v32  ;;  %v2102_v32 = vld [vmem:[%s2739_s7 + $0x74] ss:$8 sps:$4 sm:$0xff]   ;;  %v2127_v51 = vld [vmem:[%s2739_s7 + $0xe0] ss:$8 sps:$4 sm:$0xff]  }
  0x23   : > { %753 = vmatprep.subr.bf16.mxu0 %v2022_v15  ;;  %v2046_v15 = vld [vmem:[%s2735_s3 + $0x94] ss:$8 sps:$4 sm:$0xff]   ;;  %v2105_v33 = vld [vmem:[%s2739_s7 + $0x64] ss:$8 sps:$4 sm:$0xff]  }
  0x24   : > { %1051 = vmatpush1.bf16.msra.mxu1 %v2066_v56  ;;  %v2135_v54 = vld [vmem:[%s2739_s7 + $0xc4] ss:$8 sps:$4 sm:$0xff]  }
  0x25   : > { %1052 = vmatprep.subr.bf16.mxu1 %v2067_v61  ;;  %v524_v61 = vmax.f32 %v508_v53, 0.0  ;;  %v2130_v53 = vld [vmem:[%s2739_s7 + $0xd0] ss:$8 sps:$4 sm:$0xff]  }
  0x26   : > { %754 = vmatpush1.bf16.msra.mxu0 %v2024_v22  ;;  %v501_v22 = vadd.f32 %v2437_v4, %v473_v9 }
  0x27   : > { %755 = vmatprep.subr.bf16.mxu0 %v2025_v25  ;;  %v503_v25 = vadd.f32 %v2437_v4, %v475_v10  ;;  %v2088_v10 = vld [vmem:[%s2737_s5 + $0xb4] ss:$8 sps:$4 sm:$0xff]  }
  0x28   : > { %1053 = vmatpush1.bf16.msra.mxu1 %v2069_v0  ;;  %v517_v36 = vmax.f32 %v501_v22, 0.0  ;;  %v2085_v0 = vld [vmem:[%s2737_s5 + $0xc4] ss:$8 sps:$4 sm:$0xff]  }
  0x29   : > { %1054 = vmatprep.subr.bf16.mxu1 %v2070_v2  ;;  %v519_v37 = vmax.f32 %v503_v25, 0.0 }
  0x2a   : > { %756 = vmatpush1.bf16.msra.mxu0 %v2027_v26  ;;  %v2075_v26 = vld [vmem:[%s2737_s5] ss:$8 sps:$4 sm:$0xff]  }
  0x2b   : > { %757 = vmatprep.subr.bf16.mxu0 %v2028_v34  ;;  %v450_v34 = vunpack.c.h.bf16 %v437_v18 }
  0x2c   : > { %1055 = vmatpush1.bf16.msra.mxu1 %v2072_v11 }
  0x2d   : > { %1056 = vmatprep.subr.bf16.mxu1 %v2073_v13  ;;  %v478_v43 = vadd.f32 %v2334_v23, %v450_v34  ;;  %v481_v13 = vadd.f32 %v2409_v55, %v453_v5  ;;  %v2103_v34 = vld [vmem:[%s2739_s7 + $0x60] ss:$8 sps:$4 sm:$0xff]  }
  0x2e   : > { %758 = vmatpush2.bf16.msra.mxu0 %v2030_v38  ;;  %v2078_v38 = vld [vmem:[%s2737_s5 + $0xf0] ss:$8 sps:$4 sm:$0xff]  }
  0x2f   : > { %759 = vmatprep.subr.bf16.mxu0 %v2031_v40  ;;  %v2079_v40 = vld [vmem:[%s2737_s5 + $0xe4] ss:$8 sps:$4 sm:$0xff]   ;;  %v506_v52 = vadd.f32 %v2338_v24, %v478_v43  ;;  %v509_v19 = vadd.f32 %v2437_v4, %v481_v13  ;;  %v2120_v43 = vld [vmem:[%s2739_s7 + $0x14] ss:$8 sps:$4 sm:$0xff]  }
  0x30   : > { %1057 = vmatpush1.bf16.msra.mxu1 %v2075_v26  ;;  %v2091_v26 = vld [vmem:[%s2737_s5 + $0xa4] ss:$8 sps:$4 sm:$0xff]  }
  0x31   : > { %1058 = vmatprep.subr.bf16.mxu1 %v2076_v28  ;;  %v522_v60 = vmax.f32 %v506_v52, 0.0  ;;  %v525_v22 = vmax.f32 %v509_v19, 0.0  ;;  %v2096_v28 = vld [vmem:[%s2737_s5 + $0x90] ss:$8 sps:$4 sm:$0xff]   ;;  %v2132_v52 = vld [vmem:[%s2739_s7 + $0xd4] ss:$8 sps:$4 sm:$0xff]  }
  0x32   : > { %760 = vmatpush2.bf16.msra.mxu0 %v2033_v42  ;;  %v440_v42 = vld [vmem:[%s2732_s0 + $0x38] sm:$0xff] }
  0x33   : > { %761 = vmatprep.subr.bf16.mxu0 %v2034_v45  ;;  %v2081_v45 = vld [vmem:[%s2737_s5 + $0xe0] ss:$8 sps:$4 sm:$0xff]   ;;  %v456_v56 = vunpack.c.h.bf16 %v440_v42  ;;  %v455_v6 = vunpack.c.l.bf16 %v440_v42  ;;  %v534_v8 = vpack.c.bf16 %v524_v61, %v522_v60 }
  0x34   : > { %1059 = vmatpush2.bf16.msra.mxu1 %v2078_v38  ;;  %v2109_v38 = vld [vmem:[%s2739_s7 + $0x40] ss:$8 sps:$4 sm:$0xff]  }
  0x35   : > { %1060 = vmatprep.subr.bf16.mxu1 %v2079_v40  ;;  %v484_v63 = vadd.f32 %v2334_v23, %v456_v56  ;;  %v510_v23 = vadd.f32 %v2338_v24, %v482_v62  ;;  %v2112_v40 = vld [vmem:[%s2739_s7 + $0x30] ss:$8 sps:$4 sm:$0xff]   ;;  %v2115_v42 = vld [vmem:[%s2739_s7 + $0x20] ss:$8 sps:$4 sm:$0xff]  }
  0x36   : > { %762 = vmatpush2.bf16.msra.mxu0 %v2036_v46  ;;  %v2082_v46 = vld [vmem:[%s2737_s5 + $0xd4] ss:$8 sps:$4 sm:$0xff]   ;;  %v2133_v56 = vld [vmem:[%s2739_s7 + $0xc0] ss:$8 sps:$4 sm:$0xff]  }
  0x37   : > { %763 = vmatprep.subr.bf16.mxu0 %v2037_v50  ;;  %v449_v50 = vunpack.c.l.bf16 %v437_v18  ;;  %v512_v9 = vadd.f32 %v2338_v24, %v484_v63  ;;  %v526_v17 = vmax.f32 %v510_v23, 0.0 }
  0x38   : > { %1061 = vmatpush2.bf16.msra.mxu1 %v2081_v45  ;;  %v2123_v45 = vld [vmem:[%s2739_s7 + $0x4] ss:$8 sps:$4 sm:$0xff]  }
  0x39   : > { %1062 = vmatprep.subr.bf16.mxu1 %v2082_v46  ;;  %v528_v24 = vmax.f32 %v512_v9, 0.0  ;;  %v2121_v46 = vld [vmem:[%s2739_s7] ss:$8 sps:$4 sm:$0xff]  }
  0x3a   : > { %764 = vmatpush2.bf16.msra.mxu0 %v2039_v57  ;;  %v2084_v57 = vld [vmem:[%s2737_s5 + $0xd0] ss:$8 sps:$4 sm:$0xff]  }
  0x3b   : > { %765 = vmatprep.subr.bf16.mxu0 %v2040_v58  ;;  %v477_v58 = vadd.f32 %v2409_v55, %v449_v50  ;;  %v536_v21 = vpack.c.bf16 %v528_v24, %v526_v17  ;;  %v2129_v50 = vld [vmem:[%s2739_s7 + $0xe4] ss:$8 sps:$4 sm:$0xff]  }
  0x3c   : > { %1063 = vmatpush2.bf16.msra.mxu1 %v2084_v57  ;;  %v2138_v57 = vld [vmem:[%s2739_s7 + $0xb4] ss:$8 sps:$4 sm:$0xff]  }
  0x3d   : > { %v505_v2 = vadd.f32 %v2437_v4, %v477_v58  ;;  %1064 = vmatprep.subr.bf16.mxu1 %v2085_v0  ;;  %v2136_v58 = vld [vmem:[%s2739_s7 + $0xb0] ss:$8 sps:$4 sm:$0xff]  }
  0x3e   : > { %766 = vmatpush2.bf16.msra.mxu0 %v2042_v1  ;;  %v531_v1 = vpack.c.bf16 %v519_v37, %v517_v36  ;;  %v2106_v36 = vld [vmem:[%s2739_s7 + $0x50] ss:$8 sps:$4 sm:$0xff]   ;;  %v2111_v37 = vld [vmem:[%s2739_s7 + $0x44] ss:$8 sps:$4 sm:$0xff]  }
  0x3f   : > { %767 = vmatprep.subr.bf16.mxu0 %v2043_v3  ;;  %v507_v3 = vadd.f32 %v2437_v4, %v479_v59  ;;  %v521_v11 = vmax.f32 %v505_v2, 0.0  ;;  %v569_v59 = vld [vmem:[%s2736_s4] sm:$0x3] }
  0x40   : > { %1065 = vmatpush2.bf16.msra.mxu1 %v2087_v7  ;;  %v578_v61 = vrot.slane %v569_v59, %v2308_v14  ;;  %v574_v62 = vrot.slane %v569_v59, %v2389_v47  ;;  %v2142_v59 = vld [vmem:[%s2739_s7 + $0x90] ss:$8 sps:$4 sm:$0xff]  }
  0x41   : > { %1066 = vmatprep.subr.bf16.mxu1 %v2088_v10 }
  0x42   : > { %768 = vmatpush2.bf16.msra.mxu0 %v2045_v12  ;;  %v523_v12 = vmax.f32 %v507_v3, 0.0 }
  0x43   : > { %769 = vmatprep.subr.bf16.mxu0 %v2046_v15  ;;  %v483_v15 = vadd.f32 %v2409_v55, %v455_v6 }
  0x44   : > { %v533_v18 = vpack.c.bf16 %v523_v12, %v521_v11  ;;  %1067 = vmatpush2.bf16.msra.mxu1 %v2090_v16 }
  0x45   : > { %v511_v20 = vadd.f32 %v2437_v4, %v483_v15  ;;  %1068 = vmatprep.subr.bf16.mxu1 %v2091_v26  ;;  %v2094_v4 = vld [vmem:[%s2737_s5 + $0x94] ss:$8 sps:$4 sm:$0xff]  }
  0x46   : > { %770 = vmatpush2.bf16.msra.mxu0 %v2048_v27  ;;  %v2093_v27 = vld [vmem:[%s2737_s5 + $0xa0] ss:$8 sps:$4 sm:$0xff]  }
  0x47   : > { %771 = vmatprep.subr.bf16.mxu0 %v2049_v29  ;;  %v527_v25 = vmax.f32 %v511_v20, 0.0  ;;  %v2097_v29 = vld [vmem:[%s2737_s5 + $0x84] ss:$8 sps:$4 sm:$0xff]  }
  0x48   : > { %1069 = vmatpush2.bf16.msra.mxu1 %v2093_v27 }
  0x49   : > { %v535_v55 = vpack.c.bf16 %v527_v25, %v525_v22  ;;  %1070 = vmatprep.subr.bf16.mxu1 %v2094_v4 }
  0x4a   : > { %772 = vmatpush2.bf16.msra.mxu0 %v2051_v39  ;;  %v2114_v39 = vld [vmem:[%s2739_s7 + $0x34] ss:$8 sps:$4 sm:$0xff]  }
  0x4b   : > { %1343 = vmatprep.subr.bf16.mxu0 %v2102_v32 }
  0x4c   : > { %1071 = vmatpush2.bf16.msra.mxu1 %v2096_v28 }
  0x4d   : > { %774 = vmatmul.mubr.bf16.vlgmr.msra.gmra.mxu0 %v529_v48  ;;  %1072 = vmatprep.subr.bf16.mxu1 %v2097_v29  ;;  %v2126_v48 = vld [vmem:[%s2739_s7 + $0xf4] ss:$8 sps:$4 sm:$0xff]  }
  0x4e   : > { %783 = vmatprep.mubr.bf16.mxu0 %v532_v49  ;;  %1344 = vmatpush1.bf16.msra.mxu0 %v2100_v31  ;;  %v2124_v49 = vld [vmem:[%s2739_s7 + $0xf0] ss:$8 sps:$4 sm:$0xff]  }
  0x4f   : > { %1345 = vmatprep.subr.bf16.mxu0 %v2105_v33 }
  0x50   : > { %1073 = vmatpush2.bf16.msra.mxu1 %v2099_v30 }
  0x52   : > { %1346 = vmatpush1.bf16.msra.mxu0 %v2103_v34 }
  0x53   : > { %1347 = vmatprep.subr.bf16.mxu0 %v2108_v35 }
  0x55   : > { %784 = vmatmul.mubr.bf16.gmra.mxu0 %v531_v1 }
  0x56   : > { %793 = vmatprep.mubr.bf16.mxu0 %v534_v8  ;;  %1348 = vmatpush1.bf16.msra.mxu0 %v2106_v36 }
  0x57   : > { %1349 = vmatprep.subr.bf16.mxu0 %v2111_v37 }
  0x5a   : > { %1350 = vmatpush1.bf16.msra.mxu0 %v2109_v38 }
  0x5b   : > { %1351 = vmatprep.subr.bf16.mxu0 %v2114_v39 }
  0x5d   : > { %794 = vmatmul.mubr.bf16.gmra.mxu0 %v533_v18 }
  0x5e   : > { %803 = vmatprep.mubr.bf16.mxu0 %v536_v21  ;;  %1352 = vmatpush1.bf16.msra.mxu0 %v2112_v40 }
  0x5f   : > { %1353 = vmatprep.subr.bf16.mxu0 %v2117_v41 }
  0x62   : > { %1354 = vmatpush1.bf16.msra.mxu0 %v2115_v42 }
  0x63   : > { %1355 = vmatprep.subr.bf16.mxu0 %v2120_v43 }
  0x65   : > { %804 = vmatmul.mubr.bf16.gmra.mxu0 %v535_v55 }
  0x66   : > { %1356 = vmatpush1.bf16.msra.mxu0 %v2118_v44 }
  0x67   : > { %1357 = vmatprep.subr.bf16.mxu0 %v2123_v45 }
  0x6a   : > { %1358 = vmatpush1.bf16.msra.mxu0 %v2121_v46 }
  0x6b   : > { %1359 = vmatprep.subr.bf16.mxu0 %v2126_v48 }
  0x6e   : > { %1360 = vmatpush2.bf16.msra.mxu0 %v2124_v49 }
  0x6f   : > { %1361 = vmatprep.subr.bf16.mxu0 %v2129_v50 }
  0x72   : > { %1362 = vmatpush2.bf16.msra.mxu0 %v2127_v51 }
  0x73   : > { %1363 = vmatprep.subr.bf16.mxu0 %v2132_v52 }
  0x76   : > { %1364 = vmatpush2.bf16.msra.mxu0 %v2130_v53 }
  0x77   : > { %1365 = vmatprep.subr.bf16.mxu0 %v2135_v54 }
  0x7a   : > { %1366 = vmatpush2.bf16.msra.mxu0 %v2133_v56  ;;  %v2141_v56 = vld [vmem:[%s2739_s7 + $0xa4] ss:$8 sps:$4 sm:$0xff]  }
  0x7b   : > { %1367 = vmatprep.subr.bf16.mxu0 %v2138_v57  ;;  %v2139_v57 = vld [vmem:[%s2739_s7 + $0xa0] ss:$8 sps:$4 sm:$0xff]  }
  0x7e   : > { %1368 = vmatpush2.bf16.msra.mxu0 %v2136_v58  ;;  %v2144_v58 = vld [vmem:[%s2739_s7 + $0x94] ss:$8 sps:$4 sm:$0xff]  }
  0x7f   : > { %1369 = vmatprep.subr.bf16.mxu0 %v2141_v56 }
  0x82   : > { %1370 = vmatpush2.bf16.msra.mxu0 %v2139_v57 }
  0x83   : > { %1371 = vmatprep.subr.bf16.mxu0 %v2144_v58 }
  0x86   : > { %1372 = vmatpush2.bf16.msra.mxu0 %v2142_v59 }
 0x10d   : > { %v775_v60 = vpop.f32.mrf.mxu0 }
 0x10e   : > { %v776_v3 = vadd.f32 %v775_v60, %v574_v62  ;;  %v2147_v60 = vld [vmem:[%s2739_s7 + $0x84] ss:$8 sps:$4 sm:$0xff]  }
 0x10f   : > { %v777_v63 = vpop.f32.mrf.mxu0  ;;  %1373 = vmatprep.subr.bf16.mxu0 %v2147_v60 }
 0x110   : > { %v778_v1 = vadd.f32 %v777_v63, %v578_v61  ;;  %v814_v10 = vmax.f32 %v776_v3, 0.0  ;;  %v2149_v63 = vld [vmem:[%s2741_s9 + $0x38] sm:$0xff]   ;;  %v2153_v3 = vld [vmem:[%s2741_s9 + $0x28] sm:$0xff]  }
 0x111   : > { %v779_v0 = vpop.f32.mrf.mxu0 }
 0x112   : > { %v780_v2 = vadd.f32 %v779_v0, %v574_v62  ;;  %v815_v23 = vmax.f32 %v778_v1, 0.0  ;;  %v2150_v0 = vld [vmem:[%s2741_s9 + $0x70] sm:$0xff]  }
 0x113   : > { %v781_v5 = vpop.f32.mrf.mxu0  ;;  %v2151_v1 = vld [vmem:[%s2741_s9 + $0x30] sm:$0xff]  }
 0x114   : > { %v782_v6 = vadd.f32 %v781_v5, %v578_v61  ;;  %v816_v7 = vmax.f32 %v780_v2, 0.0  ;;  %v2152_v2 = vld [vmem:[%s2741_s9 + $0x68] sm:$0xff]   ;;  %v2154_v5 = vld [vmem:[%s2741_s9 + $0x60] sm:$0xff]  }
 0x115   : > { %v785_v8 = vpop.f32.mrf.mxu0 }
 0x116   : > { %v817_v9 = vmax.f32 %v782_v6, 0.0  ;;  %v830_v13 = vpack.c.bf16 %v816_v7, %v814_v10  ;;  %v786_v24 = vadd.f32 %v785_v8, %v574_v62  ;;  %v2155_v6 = vld [vmem:[%s2741_s9 + $0x20] sm:$0xff]   ;;  %v2156_v7 = vld [vmem:[%s2741_s9 + $0x58] sm:$0xff]  }
 0x117   : > { %v787_v11 = vpop.f32.mrf.mxu0  ;;  %v2157_v8 = vld [vmem:[%s2741_s9 + $0x18] sm:$0xff]  }
 0x118   : > { %v831_v12 = vpack.c.bf16 %v817_v9, %v815_v23  ;;  %v788_v16 = vadd.f32 %v787_v11, %v578_v61  ;;  %v818_v55 = vmax.f32 %v786_v24, 0.0  ;;  %v870_v23 = vld [vmem:[%s2738_s6] sm:$0x3] }
 0x119   : > { %v789_v15 = vpop.f32.mrf.mxu0  ;;  %v879_v10 = vrot.slane %v870_v23, %v2308_v14  ;;  %v875_v11 = vrot.slane %v870_v23, %v2389_v47  ;;  %v2161_v23 = vld [vmem:[%s2741_s9 + $0x8] sm:$0xff]  }
 0x11a   : > { %v790_v17 = vadd.f32 %v789_v15, %v574_v62  ;;  %1074 = vmatprep.mubr.bf16.mxu1 %v831_v12  ;;  %v819_v22 = vmax.f32 %v788_v16, 0.0 }
 0x11b   : > { %v791_v18 = vpop.f32.mrf.mxu0  ;;  %1075 = vmatmul.mubr.bf16.vlgmr.msra.gmra.mxu1 %v830_v13 }
 0x11c   : > { %v792_v19 = vadd.f32 %v791_v18, %v578_v61  ;;  %v820_v20 = vmax.f32 %v790_v17, 0.0 }
 0x11d   : > { %v795_v21 = vpop.f32.mrf.mxu0 }
 0x11e   : > { %v821_v25 = vmax.f32 %v792_v19, 0.0  ;;  %v832_v4 = vpack.c.bf16 %v820_v20, %v818_v55  ;;  %v796_v31 = vadd.f32 %v795_v21, %v574_v62 }
 0x11f   : > { %v797_v26 = vpop.f32.mrf.mxu0 }
 0x120   : > { %v833_v27 = vpack.c.bf16 %v821_v25, %v819_v22  ;;  %v798_v29 = vadd.f32 %v797_v26, %v578_v61  ;;  %v822_v38 = vmax.f32 %v796_v31, 0.0 }
 0x121   : > { %v799_v28 = vpop.f32.mrf.mxu0 }
 0x122   : > { %v800_v30 = vadd.f32 %v799_v28, %v574_v62  ;;  %1084 = vmatprep.mubr.bf16.mxu1 %v833_v27  ;;  %v823_v36 = vmax.f32 %v798_v29, 0.0 }
 0x123   : > { %v801_v32 = vpop.f32.mrf.mxu0  ;;  %1085 = vmatmul.mubr.bf16.gmra.mxu1 %v832_v4 }
 0x124   : > { %v802_v33 = vadd.f32 %v801_v32, %v578_v61  ;;  %v824_v34 = vmax.f32 %v800_v30, 0.0 }
 0x125   : > { %v805_v35 = vpop.f32.mrf.mxu0 }
 0x126   : > { %v825_v37 = vmax.f32 %v802_v33, 0.0  ;;  %v834_v41 = vpack.c.bf16 %v824_v34, %v822_v38  ;;  %v806_v45 = vadd.f32 %v805_v35, %v574_v62 }
 0x127   : > { %v807_v39 = vpop.f32.mrf.mxu0 }
 0x128   : > { %v835_v40 = vpack.c.bf16 %v825_v37, %v823_v36  ;;  %v808_v43 = vadd.f32 %v807_v39, %v578_v61  ;;  %v826_v52 = vmax.f32 %v806_v45, 0.0 }
 0x129   : > { %v809_v42 = vpop.f32.mrf.mxu0 }
 0x12a   : > { %v810_v44 = vadd.f32 %v809_v42, %v574_v62  ;;  %1094 = vmatprep.mubr.bf16.mxu1 %v835_v40  ;;  %v827_v50 = vmax.f32 %v808_v43, 0.0  ;;  %v2148_v62 = vld [vmem:[%s2741_s9 + $0x78] sm:$0xff]  }
 0x12b   : > { %v811_v46 = vpop.f32.mrf.mxu0  ;;  %1095 = vmatmul.mubr.bf16.gmra.mxu1 %v834_v41  ;;  %1940 = vmatprep.subr.bf16.mxu1 %v2148_v62 }
 0x12c   : > { %v812_v48 = vadd.f32 %v811_v46, %v578_v61  ;;  %v828_v49 = vmax.f32 %v810_v44, 0.0  ;;  %v2145_v61 = vld [vmem:[%s2739_s7 + $0x80] ss:$8 sps:$4 sm:$0xff]   ;;  %1941 = vmatpush3.bf16.msra.mxu1 %v2149_v63 }
 0x12d   : > { %1374 = vmatpush2.bf16.msra.mxu0 %v2145_v61  ;;  %1942 = vmatprep.subr.bf16.mxu1 %v2150_v0 }
 0x12e   : > { %v829_v51 = vmax.f32 %v812_v48, 0.0  ;;  %v836_v54 = vpack.c.bf16 %v828_v49, %v826_v52 }
 0x130   : > { %v837_v53 = vpack.c.bf16 %v829_v51, %v827_v50  ;;  %1943 = vmatpush3.bf16.msra.mxu1 %v2151_v1 }
 0x131   : > { %1944 = vmatprep.subr.bf16.mxu1 %v2152_v2 }
 0x132   : > { %1104 = vmatprep.mubr.bf16.mxu1 %v837_v53 }
 0x133   : > { %1105 = vmatmul.mubr.bf16.gmra.mxu1 %v836_v54 }
 0x134   : > { %1945 = vmatpush3.bf16.msra.mxu1 %v2153_v3 }
 0x135   : > { %1946 = vmatprep.subr.bf16.mxu1 %v2154_v5 }
 0x138   : > { %1947 = vmatpush3.bf16.msra.mxu1 %v2155_v6  ;;  %v2158_v6 = vld [vmem:[%s2741_s9 + $0x50] sm:$0xff]  }
 0x139   : > { %1948 = vmatprep.subr.bf16.mxu1 %v2156_v7  ;;  %v2159_v7 = vld [vmem:[%s2741_s9 + $0x10] sm:$0xff]  }
 0x13c   : > { %1949 = vmatpush3.bf16.msra.mxu1 %v2157_v8  ;;  %v2160_v8 = vld [vmem:[%s2741_s9 + $0x48] sm:$0xff]  }
 0x13d   : > { %1950 = vmatprep.subr.bf16.mxu1 %v2158_v6 }
 0x140   : > { %1951 = vmatpush3.bf16.msra.mxu1 %v2159_v7 }
 0x141   : > { %1952 = vmatprep.subr.bf16.mxu1 %v2160_v8 }
 0x144   : > { %1953 = vmatpush3.bf16.msra.mxu1 %v2161_v23 }
 0x1db   : > { %v1076_v9 = vpop.f32.mrf.mxu1 }
 0x1dc   : > { %v1077_v17 = vadd.f32 %v1076_v9, %v875_v11  ;;  %v2162_v9 = vld [vmem:[%s2741_s9 + $0x40] sm:$0xff]  }
 0x1dd   : > { %v1078_v12 = vpop.f32.mrf.mxu1  ;;  %1954 = vmatprep.subr.bf16.mxu1 %v2162_v9 }
 0x1de   : > { %v1079_v15 = vadd.f32 %v1078_v12, %v879_v10  ;;  %v1115_v25 = vmax.f32 %v1077_v17, 0.0 }
 0x1df   : > { %v1080_v13 = vpop.f32.mrf.mxu1 }
 0x1e0   : > { %v1081_v16 = vadd.f32 %v1080_v13, %v875_v11  ;;  %v1116_v21 = vmax.f32 %v1079_v15, 0.0 }
 0x1e1   : > { %v1082_v24 = vpop.f32.mrf.mxu1 }
 0x1e2   : > { %v1083_v18 = vadd.f32 %v1082_v24, %v879_v10  ;;  %v1117_v19 = vmax.f32 %v1081_v16, 0.0 }
 0x1e3   : > { %v1086_v20 = vpop.f32.mrf.mxu1 }
 0x1e4   : > { %v1118_v22 = vmax.f32 %v1083_v18, 0.0  ;;  %v1131_v27 = vpack.c.bf16 %v1117_v19, %v1115_v25  ;;  %v1087_v30 = vadd.f32 %v1086_v20, %v875_v11 }
 0x1e5   : > { %v1088_v55 = vpop.f32.mrf.mxu1 }
 0x1e6   : > { %v1132_v26 = vpack.c.bf16 %v1118_v22, %v1116_v21  ;;  %v1089_v28 = vadd.f32 %v1088_v55, %v879_v10  ;;  %v1119_v37 = vmax.f32 %v1087_v30, 0.0 }
 0x1e7   : > { %v1090_v4 = vpop.f32.mrf.mxu1 }
 0x1e8   : > { %v1091_v29 = vadd.f32 %v1090_v4, %v875_v11  ;;  %1375 = vmatprep.mubr.bf16.mxu0 %v1132_v26  ;;  %v1120_v35 = vmax.f32 %v1089_v28, 0.0 }
 0x1e9   : > { %v1092_v31 = vpop.f32.mrf.mxu1  ;;  %1376 = vmatmul.mubr.bf16.vlgmr.msra.gmra.mxu0 %v1131_v27 }
 0x1ea   : > { %v1093_v32 = vadd.f32 %v1092_v31, %v879_v10  ;;  %v1121_v33 = vmax.f32 %v1091_v29, 0.0 }
 0x1eb   : > { %v1096_v34 = vpop.f32.mrf.mxu1 }
 0x1ec   : > { %v1122_v36 = vmax.f32 %v1093_v32, 0.0  ;;  %v1133_v40 = vpack.c.bf16 %v1121_v33, %v1119_v37  ;;  %v1097_v44 = vadd.f32 %v1096_v34, %v875_v11 }
 0x1ed   : > { %v1098_v38 = vpop.f32.mrf.mxu1 }
 0x1ee   : > { %v1134_v39 = vpack.c.bf16 %v1122_v36, %v1120_v35  ;;  %v1099_v42 = vadd.f32 %v1098_v38, %v879_v10  ;;  %v1123_v52 = vmax.f32 %v1097_v44, 0.0 }
 0x1ef   : > { %v1100_v41 = vpop.f32.mrf.mxu1 }
 0x1f0   : > { %v1101_v43 = vadd.f32 %v1100_v41, %v875_v11  ;;  %1385 = vmatprep.mubr.bf16.mxu0 %v1134_v39  ;;  %v1124_v50 = vmax.f32 %v1099_v42, 0.0 }
 0x1f1   : > { %v1102_v45 = vpop.f32.mrf.mxu1  ;;  %1386 = vmatmul.mubr.bf16.gmra.mxu0 %v1133_v40 }
 0x1f2   : > { %v1103_v46 = vadd.f32 %v1102_v45, %v879_v10  ;;  %v1125_v48 = vmax.f32 %v1101_v43, 0.0 }
 0x1f3   : > { %v1106_v49 = vpop.f32.mrf.mxu1 }
 0x1f4   : > { %v1126_v51 = vmax.f32 %v1103_v46, 0.0  ;;  %v1135_v56 = vpack.c.bf16 %v1125_v48, %v1123_v52  ;;  %v1107_v60 = vadd.f32 %v1106_v49, %v875_v11 }
 0x1f5   : > { %v1108_v53 = vpop.f32.mrf.mxu1 }
 0x1f6   : > { %v1136_v54 = vpack.c.bf16 %v1126_v51, %v1124_v50  ;;  %v1109_v58 = vadd.f32 %v1108_v53, %v879_v10  ;;  %v1127_v2 = vmax.f32 %v1107_v60, 0.0 }
 0x1f7   : > { %v1110_v57 = vpop.f32.mrf.mxu1 }
 0x1f8   : > { %v1111_v59 = vadd.f32 %v1110_v57, %v875_v11  ;;  %1395 = vmatprep.mubr.bf16.mxu0 %v1136_v54  ;;  %v1128_v0 = vmax.f32 %v1109_v58, 0.0  ;;  %v1171_v11 = vld [vmem:[%s2740_s8] sm:$0x3] }
 0x1f9   : > { %v1112_v61 = vpop.f32.mrf.mxu1  ;;  %1396 = vmatmul.mubr.bf16.gmra.mxu0 %v1135_v56  ;;  %v1180_v13 = vrot.slane %v1171_v11, %v2308_v14  ;;  %v1176_v15 = vrot.slane %v1171_v11, %v2389_v47 }
 0x1fa   : > { %v1113_v62 = vadd.f32 %v1112_v61, %v879_v10  ;;  %v1129_v63 = vmax.f32 %v1111_v59, 0.0  ;;  %v2163_v10 = vld [vmem:[%s2741_s9] sm:$0xff]  }
 0x1fb   : > { %1955 = vmatpush3.bf16.msra.mxu1 %v2163_v10  ;;  %v1881_v10 = vld [vmem:[%s2742_s10] ss:$0 sm:$0xff] }
 0x1fc   : > { %v1130_v1 = vmax.f32 %v1113_v62, 0.0  ;;  %v1137_v5 = vpack.c.bf16 %v1129_v63, %v1127_v2 }
 0x1fe   : > { %v1138_v3 = vpack.c.bf16 %v1130_v1, %v1128_v0 }
 0x200   : > { %1405 = vmatprep.mubr.bf16.mxu0 %v1138_v3 }
 0x201   : > { %1406 = vmatmul.mubr.bf16.gmra.mxu0 %v1137_v5 }
 0x2a9   : > { %v1377_v12 = vpop.f32.mrf.mxu0 }
 0x2aa   : > { %v1378_v19 = vadd.f32 %v1377_v12, %v1176_v15 }
 0x2ab   : > { %v1379_v16 = vpop.f32.mrf.mxu0 }
 0x2ac   : > { %v1380_v24 = vadd.f32 %v1379_v16, %v1180_v13  ;;  %v1416_v27 = vmax.f32 %v1378_v19, 0.0 }
 0x2ad   : > { %v1381_v17 = vpop.f32.mrf.mxu0 }
 0x2ae   : > { %v1382_v18 = vadd.f32 %v1381_v17, %v1176_v15  ;;  %v1417_v55 = vmax.f32 %v1380_v24, 0.0 }
 0x2af   : > { %v1383_v20 = vpop.f32.mrf.mxu0 }
 0x2b0   : > { %v1384_v21 = vadd.f32 %v1383_v20, %v1180_v13  ;;  %v1418_v22 = vmax.f32 %v1382_v18, 0.0 }
 0x2b1   : > { %v1387_v25 = vpop.f32.mrf.mxu0 }
 0x2b2   : > { %v1419_v26 = vmax.f32 %v1384_v21, 0.0  ;;  %v1432_v29 = vpack.c.bf16 %v1418_v22, %v1416_v27  ;;  %v1388_v47 = vadd.f32 %v1387_v25, %v1176_v15 }
 0x2b3   : > { %v1389_v4 = vpop.f32.mrf.mxu0 }
 0x2b4   : > { %v1433_v28 = vpack.c.bf16 %v1419_v26, %v1417_v55  ;;  %v1390_v31 = vadd.f32 %v1389_v4, %v1180_v13  ;;  %v1420_v38 = vmax.f32 %v1388_v47, 0.0 }
 0x2b5   : > { %v1391_v30 = vpop.f32.mrf.mxu0 }
 0x2b6   : > { %v1392_v14 = vadd.f32 %v1391_v30, %v1176_v15  ;;  %1607 = vmatprep.mubr.bf16.mxu1 %v1433_v28  ;;  %v1421_v36 = vmax.f32 %v1390_v31, 0.0 }
 0x2b7   : > { %v1393_v32 = vpop.f32.mrf.mxu0  ;;  %1608 = vmatmul.mubr.bf16.vlgmr.msra.gmra.mxu1 %v1432_v29 }
 0x2b8   : > { %v1394_v33 = vadd.f32 %v1393_v32, %v1180_v13  ;;  %v1422_v34 = vmax.f32 %v1392_v14, 0.0 }
 0x2b9   : > { %v1397_v35 = vpop.f32.mrf.mxu0 }
 0x2ba   : > { %v1423_v37 = vmax.f32 %v1394_v33, 0.0  ;;  %v1434_v41 = vpack.c.bf16 %v1422_v34, %v1420_v38  ;;  %v1398_v45 = vadd.f32 %v1397_v35, %v1176_v15 }
 0x2bb   : > { %v1399_v39 = vpop.f32.mrf.mxu0 }
 0x2bc   : > { %v1435_v40 = vpack.c.bf16 %v1423_v37, %v1421_v36  ;;  %v1400_v43 = vadd.f32 %v1399_v39, %v1180_v13  ;;  %v1424_v53 = vmax.f32 %v1398_v45, 0.0 }
 0x2bd   : > { %v1401_v42 = vpop.f32.mrf.mxu0 }
 0x2be   : > { %v1402_v44 = vadd.f32 %v1401_v42, %v1176_v15  ;;  %1615 = vmatprep.mubr.bf16.mxu1 %v1435_v40  ;;  %v1425_v51 = vmax.f32 %v1400_v43, 0.0 }
 0x2bf   : > { %v1403_v46 = vpop.f32.mrf.mxu0  ;;  %1616 = vmatmul.mubr.bf16.gmra.mxu1 %v1434_v41 }
 0x2c0   : > { %v1404_v48 = vadd.f32 %v1403_v46, %v1180_v13  ;;  %v1426_v49 = vmax.f32 %v1402_v44, 0.0 }
 0x2c1   : > { %v1407_v50 = vpop.f32.mrf.mxu0 }
 0x2c2   : > { %v1427_v52 = vmax.f32 %v1404_v48, 0.0  ;;  %v1436_v57 = vpack.c.bf16 %v1426_v49, %v1424_v53  ;;  %v1408_v61 = vadd.f32 %v1407_v50, %v1176_v15 }
 0x2c3   : > { %v1409_v54 = vpop.f32.mrf.mxu0 }
 0x2c4   : > { %v1437_v56 = vpack.c.bf16 %v1427_v52, %v1425_v51  ;;  %v1410_v59 = vadd.f32 %v1409_v54, %v1180_v13  ;;  %v1428_v3 = vmax.f32 %v1408_v61, 0.0 }
 0x2c5   : > { %v1411_v58 = vpop.f32.mrf.mxu0 }
 0x2c6   : > { %v1412_v60 = vadd.f32 %v1411_v58, %v1176_v15  ;;  %1623 = vmatprep.mubr.bf16.mxu1 %v1437_v56  ;;  %v1429_v1 = vmax.f32 %v1410_v59, 0.0 }
 0x2c7   : > { %v1413_v62 = vpop.f32.mrf.mxu0  ;;  %1624 = vmatmul.mubr.bf16.gmra.mxu1 %v1436_v57 }
 0x2c8   : > { %v1414_v63 = vadd.f32 %v1413_v62, %v1180_v13  ;;  %v1430_v0 = vmax.f32 %v1412_v60, 0.0 }
 0x2ca   : > { %v1431_v2 = vmax.f32 %v1414_v63, 0.0  ;;  %v1438_v6 = vpack.c.bf16 %v1430_v0, %v1428_v3 }
 0x2cc   : > { %v1439_v5 = vpack.c.bf16 %v1431_v2, %v1429_v1 }
 0x2ce   : > { %1631 = vmatprep.mubr.bf16.mxu1 %v1439_v5 }
 0x2cf   : > { %1632 = vmatmul.mubr.bf16.gmra.mxu1 %v1438_v6 }
 0x377   : > { %v1956_v7 = vpop.f32.mrf.mxu1 }
 0x379   : > { %v1957_v8 = vpop.f32.mrf.mxu1 }
 0x37a   : > { %v1958_v9 = vadd.f32 %v1957_v8, %v1956_v7 }
 0x37b   : > { %v1959_v23 = vpop.f32.mrf.mxu1 }
 0x37c   : > { %v1610_v15 = vadd.f32 %v1958_v9, %v1881_v10 }
 0x37d   : > { %v1960_v11 = vpop.f32.mrf.mxu1 }
 0x37e   : > { %v1961_v12 = vadd.f32 %v1960_v11, %v1959_v23 }
 0x37f   : > { %v1962_v13 = vpop.f32.mrf.mxu1 }
 0x380   : > { %v1613_v16 = vadd.f32 %v1961_v12, %v1881_v10 }
 0x381   : > { %v1963_v17 = vpop.f32.mrf.mxu1 }
 0x382   : > { %v1920_v24 = vpack.c.bf16 %v1613_v16, %v1610_v15  ;;  %v1964_v19 = vadd.f32 %v1963_v17, %v1962_v13 }
 0x383   : > { %v1965_v18 = vpop.f32.mrf.mxu1 }
 0x384   : > { %1921 = vst [vmem:[%s2717_s23] sm:$0xff] %v1920_v24   ;;  %v1618_v25 = vadd.f32 %v1964_v19, %v1881_v10 }
 0x385   : > { %v1966_v20 = vpop.f32.mrf.mxu1 }
 0x386   : > { %v1967_v21 = vadd.f32 %v1966_v20, %v1965_v18 }
 0x387   : > { %v1968_v22 = vpop.f32.mrf.mxu1 }
 0x388   : > { %v1621_v55 = vadd.f32 %v1967_v21, %v1881_v10 }
 0x389   : > { %v1969_v26 = vpop.f32.mrf.mxu1 }
 0x38a   : > { %v1925_v27 = vpack.c.bf16 %v1621_v55, %v1618_v25  ;;  %v1970_v28 = vadd.f32 %v1969_v26, %v1968_v22 }
 0x38b   : > { %v1971_v4 = vpop.f32.mrf.mxu1 }
 0x38c   : > { %1937 = vst [vmem:[%s2717_s23 + $0x8] sm:$0xff] %v1925_v27   ;;  %v1626_v14 = vadd.f32 %v1970_v28, %v1881_v10 }
 0x38d   : > { %v1972_v29 = vpop.f32.mrf.mxu1 }
 0x38e   : > { %v1973_v30 = vadd.f32 %v1972_v29, %v1971_v4 }
 0x38f   : > { %v1974_v31 = vpop.f32.mrf.mxu1 }
 0x390   : > { %v1629_v47 = vadd.f32 %v1973_v30, %v1881_v10 }
 0x391   : > { %v1975_v32 = vpop.f32.mrf.mxu1 }
 0x392   : > { %v1930_v33 = vpack.c.bf16 %v1629_v47, %v1626_v14  ;;  %v1976_v35 = vadd.f32 %v1975_v32, %v1974_v31 }
 0x393   : > { %v1977_v34 = vpop.f32.mrf.mxu1 }
 0x394   : > { %1938 = vst [vmem:[%s2717_s23 + $0x10] sm:$0xff] %v1930_v33   ;;  %v1634_v38 = vadd.f32 %v1976_v35, %v1881_v10 }
 0x395   : > { %v1978_v36 = vpop.f32.mrf.mxu1 }
 0x396   : > { %v1979_v37 = vadd.f32 %v1978_v36, %v1977_v34 }
 0x398   : > { %v1637_v39 = vadd.f32 %v1979_v37, %v1881_v10 }
 0x39a   : > { %v1935_v40 = vpack.c.bf16 %v1637_v39, %v1634_v38 }
 0x39c   : > { %1939 = vst [vmem:[%s2717_s23 + $0x18] sm:$0xff] %v1935_v40  }
 0x39d PF: > { %s21_s19 = sadd.s32 1, %s2186_s19   ;;  %s2744_s17 = smov %s2182_s18 }
 0x39e   : > { %p18_p5 = scmp.ge.s32.totalorder %s21_s19, 4   ;;  %s2745_s18 = smov %s2747_s20 }
 0x3a0   :  { %20 = sbr.rel (!%p18_p5) target bundleno = 2 (0x2), region = 97 }

</bundles_post_ra>
